<compile_context>
chip_gen: v6e
topology: v6e:2x2x1
jax: 0.10.0
libtpu: 0.0.40
codegen_flags: <defaults>
</compile_context>

<pallas_src>
import functools

import jax
import jax.numpy as jnp
from jax.experimental import pallas as pl
from jax.experimental.pallas import tpu as pltpu  # noqa: F401  (not needed at these sizes)


_LANE = 128         # all feature dims padded to a multiple of this (lane-dense)
_SUBLANE_BF16 = 16  # bf16 packs 16 rows per sublane group


def _round_up(x, m):
    return ((x + m - 1) // m) * m


def _mlp_kernel(*refs, num_layers):
    """Fused MLP: x -> [Linear -> ReLU]*(n-1) -> Linear.

    refs = (x_ref, w0, b0, w1, b1, ..., o_ref).
    x is bf16 [B, Din_pad]; weights are [Din_pad, Dout_pad] bf16; biases are
    [1, Dout_pad] f32. The Python layer loop unrolls at trace time, so all
    intermediate activations live in vregs/VMEM and never touch HBM.
    """
    x_ref = refs[0]
    o_ref = refs[-1]
    wb = refs[1:-1]

    h = x_ref[...]                                   # bf16, MXU-native LHS
    for i in range(num_layers):
        w = wb[2 * i][...]                           # bf16 [Din_pad, Dout_pad]
        b = wb[2 * i + 1][...]                       # f32  [1, Dout_pad]
        acc = jnp.dot(h, w, preferred_element_type=jnp.float32) + b
        if i < num_layers - 1:
            acc = jnp.maximum(acc, 0.0)
            h = acc.astype(jnp.bfloat16)             # keep LHS bf16 for next dot
        else:
            h = acc                                  # final layer stays f32
    o_ref[...] = h.astype(o_ref.dtype)


def _fused_mlp_call(x2d_bf16, w_ts, bs):
    """x2d_bf16: [B_pad, Din_pad] bf16. Returns [B_pad, Dout_pad] f32."""
    num_layers = len(w_ts)
    dout_pad = w_ts[-1].shape[1]
    B_pad = x2d_bf16.shape[0]

    in_specs = [pl.BlockSpec(x2d_bf16.shape, lambda: (0, 0))]
    operands = [x2d_bf16]
    for w_t, b in zip(w_ts, bs):
        in_specs.append(pl.BlockSpec(w_t.shape, lambda: (0, 0)))
        in_specs.append(pl.BlockSpec(b.shape, lambda: (0, 0)))
        operands.extend([w_t, b])

    kernel = functools.partial(_mlp_kernel, num_layers=num_layers)
    return pl.pallas_call(
        kernel,
        out_shape=jax.ShapeDtypeStruct((B_pad, dout_pad), jnp.float32),
        in_specs=in_specs,
        out_specs=pl.BlockSpec((B_pad, dout_pad), lambda: (0, 0)),
    )(*operands)


def _forward_impl(x, w_ts, bs, *, din_pad, output_size):
    """Full forward: flatten -> pad -> fused kernel -> slice. Runs under jit."""
    B = x.shape[0]
    x2d = x.reshape(B, -1)

    # Pad feature dim to the padded layer-0 fan_in (zero cols match zero weight rows).
    din = x2d.shape[1]
    if din_pad != din:
        x2d = jnp.pad(x2d, ((0, 0), (0, din_pad - din)))

    # Pad batch to a full bf16 sublane group; extra rows sliced off below.
    B_pad = _round_up(B, _SUBLANE_BF16)
    if B_pad != B:
        x2d = jnp.pad(x2d, ((0, B_pad - B), (0, 0)))

    out = _fused_mlp_call(x2d.astype(jnp.bfloat16), w_ts, bs)
    return out[:B, :output_size]


class DenseNNPallas:
    """JAX/Pallas port of the PyTorch DenseNN module (single fused kernel)."""

    def __init__(self, input_size, hidden_layers, output_size, key):
        layer_sizes = [input_size] + list(hidden_layers) + [output_size]
        padded_sizes = [_round_up(s, _LANE) for s in layer_sizes]
        self.output_size = output_size
        self.w_ts = []   # [Din_pad, Dout_pad] bf16, pre-transposed + padded at init
        self.bs = []     # [1, Dout_pad] f32
        n = len(layer_sizes) - 1
        for i in range(n):
            fan_in, fan_out = layer_sizes[i], layer_sizes[i + 1]
            pin, pout = padded_sizes[i], padded_sizes[i + 1]
            key, kw, kb = jax.random.split(key, 3)
            # Deterministic init mimicking nn.Linear's U(-1/sqrt(fan_in), 1/sqrt(fan_in)).
            bound = 1.0 / (fan_in ** 0.5)
            w = jax.random.uniform(kw, (fan_out, fan_in), jnp.float32, -bound, bound)
            b = jax.random.uniform(kb, (fan_out,), jnp.float32, -bound, bound)
            w_t = jnp.transpose(w)                                  # [fan_in, fan_out]
            w_t = jnp.pad(w_t, ((0, pin - fan_in), (0, pout - fan_out)))
            b2 = jnp.pad(b.reshape(1, fan_out), ((0, 0), (0, pout - fan_out)))
            self.w_ts.append(w_t.astype(jnp.bfloat16))
            self.bs.append(b2)                                      # f32 bias row

        # Single jitted forward: fuses pad/slice, caches the pallas_call lowering.
        self._forward = jax.jit(functools.partial(
            _forward_impl, din_pad=padded_sizes[0], output_size=output_size))

    def __call__(self, x):
        return self._forward(x, self.w_ts, self.bs)


if __name__ == "__main__":
    key = jax.random.PRNGKey(0)
    k_in, k_params = jax.random.split(key)

    # Small shapes consistent with the module: NCHW input, flattened internally.
    B, C, H, W = 2, 4, 16, 16
    input_size = C * H * W            # 1024
    hidden_layers = [256, 128]
    output_size = 32

    x = jax.random.normal(k_in, (B, C, H, W), jnp.float32)

    model = DenseNNPallas(input_size, hidden_layers, output_size, k_params)
    out = jax.block_until_ready(model(x))

    assert out.shape == (B, output_size), out.shape
    assert out.dtype == jnp.float32

    # Pure-JAX reference with identical dtype handling (bf16 operands, f32 acc,
    # bf16 re-cast of intermediate activations).
    ref = x.reshape(B, -1).astype(jnp.bfloat16)
    n = len(model.w_ts)
    for i, (w_t, b) in enumerate(zip(model.w_ts, model.bs)):
        din = ref.shape[1]
        acc = jnp.dot(ref, w_t[:din], preferred_element_type=jnp.float32) + b
        if i < n - 1:
            acc = jnp.maximum(acc, 0.0)
            ref = acc.astype(jnp.bfloat16)
        else:
            ref = acc
    ref = ref[:, :output_size]
    assert jnp.allclose(out, ref, atol=1e-2, rtol=1e-2), float(
        jnp.max(jnp.abs(out - ref)))

    print("KERNEL_OK")
</pallas_src>

<mosaic_0001>
module attributes {stable_mosaic.version = 11 : i64} {
  func.func @_mlp_kernel(%arg0: memref<16x1024xbf16, #tpu.memory_space<vmem>>, %arg1: memref<1024x256xbf16, #tpu.memory_space<vmem>>, %arg2: memref<1x256xf32, #tpu.memory_space<vmem>>, %arg3: memref<256x128xbf16, #tpu.memory_space<vmem>>, %arg4: memref<1x128xf32, #tpu.memory_space<vmem>>, %arg5: memref<128x128xbf16, #tpu.memory_space<vmem>>, %arg6: memref<1x128xf32, #tpu.memory_space<vmem>>, %arg7: memref<16x128xf32, #tpu.memory_space<vmem>>) attributes {dimension_semantics = [], scalar_prefetch = 0 : i64, scratch_operands = 0 : i64, tpu.core_type = #tpu.core_type<tc>} {
    %c0 = arith.constant 0 : index
    %c0_0 = arith.constant 0 : index
    %0 = vector.load %arg0[%c0, %c0_0] : memref<16x1024xbf16, #tpu.memory_space<vmem>>, vector<16x1024xbf16>
    %c0_1 = arith.constant 0 : index
    %c0_2 = arith.constant 0 : index
    %1 = vector.load %arg1[%c0_1, %c0_2] : memref<1024x256xbf16, #tpu.memory_space<vmem>>, vector<1024x256xbf16>
    %c0_3 = arith.constant 0 : index
    %c0_4 = arith.constant 0 : index
    %2 = vector.load %arg2[%c0_3, %c0_4] : memref<1x256xf32, #tpu.memory_space<vmem>>, vector<1x256xf32>
    %cst = arith.constant dense<0.000000e+00> : vector<16x256xf32>
    %3 = tpu.matmul %0, %1, %cst {dimension_numbers = #tpu.dot_dimension_numbers<[1], [0], [0], [1], [0, 0, 1, 1], [], []>} : vector<16x1024xbf16>, vector<1024x256xbf16>, vector<16x256xf32> -> vector<16x256xf32>
    %4 = vector.broadcast %2 : vector<1x256xf32> to vector<16x256xf32>
    %5 = arith.addf %3, %4 : vector<16x256xf32>
    %cst_5 = arith.constant 0.000000e+00 : f32
    %6 = vector.broadcast %cst_5 : f32 to vector<16x256xf32>
    %7 = arith.maximumf %5, %6 : vector<16x256xf32>
    %8 = arith.truncf %7 : vector<16x256xf32> to vector<16x256xbf16>
    %c0_6 = arith.constant 0 : index
    %c0_7 = arith.constant 0 : index
    %9 = vector.load %arg3[%c0_6, %c0_7] : memref<256x128xbf16, #tpu.memory_space<vmem>>, vector<256x128xbf16>
    %c0_8 = arith.constant 0 : index
    %c0_9 = arith.constant 0 : index
    %10 = vector.load %arg4[%c0_8, %c0_9] : memref<1x128xf32, #tpu.memory_space<vmem>>, vector<1x128xf32>
    %cst_10 = arith.constant dense<0.000000e+00> : vector<16x128xf32>
    %11 = tpu.matmul %8, %9, %cst_10 {dimension_numbers = #tpu.dot_dimension_numbers<[1], [0], [0], [1], [0, 0, 1, 1], [], []>} : vector<16x256xbf16>, vector<256x128xbf16>, vector<16x128xf32> -> vector<16x128xf32>
    %12 = vector.broadcast %10 : vector<1x128xf32> to vector<16x128xf32>
    %13 = arith.addf %11, %12 : vector<16x128xf32>
    %cst_11 = arith.constant 0.000000e+00 : f32
    %14 = vector.broadcast %cst_11 : f32 to vector<16x128xf32>
    %15 = arith.maximumf %13, %14 : vector<16x128xf32>
    %16 = arith.truncf %15 : vector<16x128xf32> to vector<16x128xbf16>
    %c0_12 = arith.constant 0 : index
    %c0_13 = arith.constant 0 : index
    %17 = vector.load %arg5[%c0_12, %c0_13] : memref<128x128xbf16, #tpu.memory_space<vmem>>, vector<128x128xbf16>
    %c0_14 = arith.constant 0 : index
    %c0_15 = arith.constant 0 : index
    %18 = vector.load %arg6[%c0_14, %c0_15] : memref<1x128xf32, #tpu.memory_space<vmem>>, vector<1x128xf32>
    %cst_16 = arith.constant dense<0.000000e+00> : vector<16x128xf32>
    %19 = tpu.matmul %16, %17, %cst_16 {dimension_numbers = #tpu.dot_dimension_numbers<[1], [0], [0], [1], [0, 0, 1, 1], [], []>} : vector<16x128xbf16>, vector<128x128xbf16>, vector<16x128xf32> -> vector<16x128xf32>
    %20 = vector.broadcast %18 : vector<1x128xf32> to vector<16x128xf32>
    %21 = arith.addf %19, %20 : vector<16x128xf32>
    %c0_17 = arith.constant 0 : index
    %c0_18 = arith.constant 0 : index
    %22 = vector.load %arg7[%c0_17, %c0_18] : memref<16x128xf32, #tpu.memory_space<vmem>>, vector<16x128xf32>
    tpu.vector_store %arg7[%c0_17, %c0_18], %21 {strides = array<i32>} : memref<16x128xf32, #tpu.memory_space<vmem>>, vector<16x128xf32>,
    return
  }
}

</mosaic_0001>

<bundles_post_ra>
// kernel: _forward_impl.1
= control target key start
LH: loop header
LB: loop body
LE: loop exit
PB: predicated region body
PF: predicated region fallthrough
CT: control target
= control target key end

     0   :  { %12 = vsyncpa [#allocation3], 0  ;;  %s1801_s24 = smov [#allocation2]   ;;  %s1985_s0 = inlined_call_operand.vmem [shape: bf16[16,1024], index: 0, kind: input, shape index: {}]   ;;  %s1986_s1 = inlined_call_operand.hbm [shape: bf16[1024,256], index: 1, kind: input, shape index: {}]   ;;  %s1987_s2 = inlined_call_operand.vmem [shape: f32[1,256], index: 2, kind: input, shape index: {}]   ;;  %s1988_s3 = inlined_call_operand.vmem [shape: bf16[256,128], index: 3, kind: input, shape index: {}]   ;;  %s1989_s4 = inlined_call_operand.vmem [shape: f32[1,128], index: 4, kind: input, shape index: {}]   ;;  %s1990_s5 = inlined_call_operand.vmem [shape: bf16[128,128], index: 5, kind: input, shape index: {}]   ;;  %s1991_s6 = inlined_call_operand.vmem [shape: f32[1,128], index: 6, kind: input, shape index: {}]   ;;  %s1992_s7 = inlined_call_operand.vmem [shape: f32[16,128], index: 7, kind: output, shape index: {}]  }
   0x1   :  { %s20_s25 = sshll.u32 %s1801_s24, 4  ;;  %s21_s25 = int_to_ptr.vmem [resolvable:$true] %s20_s25 }
   0x2   :  { %s1787_s26 = scalar_lea.vmem %s21_s25, 16384  ;;  %p1792_p1 = scmp.lt.s32.totalorder %s21_s25, %s21_s25 }
   0x3   :  { %p1788_p0 = scmp.ne.s32.totalorder %s21_s25, %s1787_s26  ;;  %p1793_p2 = scmp.lt.s32.totalorder %s1787_s26, %s1787_s26 }
   0x5   :  { %p1794_p3 = por %p1793_p2, %p1792_p1 }
   0x7   :  { %p1795_p4 = pnand %p1794_p3, %p1788_p0 }
   0x9   :  { %1798 = shalt.err (!%p1795_p4)
}
   0xa   :  { %s1802_s27 = smov 128   ;;  %s1803_s28 = smov 8  }
   0xb   :  { %26 = dma.hbm_to_vmem [thread:$0]  %s1986_s1, 16384, %s21_s25, [#allocation3], %s1802_s27, %s1802_s27, %s1803_s28  }
   0xc   :  { %1799 = dma.done.wait [#allocation3], 16384  }
   0xd   :  { %1800 = vsyncadd [#allocation3], 4294950912  ;;  %v1563_v0 = vld [vmem:[#allocation2 + $0x74] ss:$8 sps:$4 sm:$0xff]   ;;  %v1567_v2 = vld [vmem:[#allocation2 + $0x70] ss:$8 sps:$4 sm:$0xff]  }
   0xe   :  { %v1565_v1 = vld [vmem:[#allocation2 + $0x174] ss:$8 sps:$4 sm:$0xff]   ;;  %869 = vmatprep.subr.bf16.mxu0 %v1563_v0  ;;  %v1568_v3 = vld [vmem:[#allocation2 + $0x170] ss:$8 sps:$4 sm:$0xff]   ;;  %v1569_v4 = vld [vmem:[#allocation2 + $0x64] ss:$8 sps:$4 sm:$0xff]  }
   0xf   :  { %912 = vmatprep.subr.bf16.mxu1 %v1565_v1  ;;  %870 = vmatpush1.bf16.msra.mxu0 %v1567_v2  ;;  %v1571_v5 = vld [vmem:[#allocation2 + $0x164] ss:$8 sps:$4 sm:$0xff]   ;;  %v1573_v6 = vld [vmem:[#allocation2 + $0x60] ss:$8 sps:$4 sm:$0xff]   ;;  %v1575_v8 = vld [vmem:[#allocation2 + $0x54] ss:$8 sps:$4 sm:$0xff]  }
  0x10   :  { %913 = vmatpush1.bf16.msra.mxu1 %v1568_v3  ;;  %871 = vmatprep.subr.bf16.mxu0 %v1569_v4  ;;  %v1574_v7 = vld [vmem:[#allocation2 + $0x160] ss:$8 sps:$4 sm:$0xff]   ;;  %v1577_v9 = vld [vmem:[#allocation2 + $0x154] ss:$8 sps:$4 sm:$0xff]   ;;  %v1579_v10 = vld [vmem:[#allocation2 + $0x50] ss:$8 sps:$4 sm:$0xff]  }
  0x11   :  { %914 = vmatprep.subr.bf16.mxu1 %v1571_v5  ;;  %v1580_v11 = vld [vmem:[#allocation2 + $0x150] ss:$8 sps:$4 sm:$0xff]   ;;  %v1581_v12 = vld [vmem:[#allocation2 + $0x44] ss:$8 sps:$4 sm:$0xff]   ;;  %v1585_v14 = vld [vmem:[#allocation2 + $0x40] ss:$8 sps:$4 sm:$0xff]  }
  0x12   :  { %v1583_v13 = vld [vmem:[#allocation2 + $0x144] ss:$8 sps:$4 sm:$0xff]   ;;  %v1586_v15 = vld [vmem:[#allocation2 + $0x140] ss:$8 sps:$4 sm:$0xff]   ;;  %v1587_v16 = vld [vmem:[#allocation2 + $0x34] ss:$8 sps:$4 sm:$0xff]  }
  0x13   :  { %872 = vmatpush1.bf16.msra.mxu0 %v1573_v6  ;;  %v1589_v17 = vld [vmem:[#allocation2 + $0x134] ss:$8 sps:$4 sm:$0xff]   ;;  %v1591_v18 = vld [vmem:[#allocation2 + $0x30] ss:$8 sps:$4 sm:$0xff]   ;;  %v1593_v20 = vld [vmem:[#allocation2 + $0x24] ss:$8 sps:$4 sm:$0xff]  }
  0x14   :  { %915 = vmatpush1.bf16.msra.mxu1 %v1574_v7  ;;  %873 = vmatprep.subr.bf16.mxu0 %v1575_v8  ;;  %v1592_v19 = vld [vmem:[#allocation2 + $0x130] ss:$8 sps:$4 sm:$0xff]   ;;  %v1595_v21 = vld [vmem:[#allocation2 + $0x124] ss:$8 sps:$4 sm:$0xff]   ;;  %v1597_v22 = vld [vmem:[#allocation2 + $0x20] ss:$8 sps:$4 sm:$0xff]  }
  0x15   :  { %916 = vmatprep.subr.bf16.mxu1 %v1577_v9  ;;  %v1598_v23 = vld [vmem:[#allocation2 + $0x120] ss:$8 sps:$4 sm:$0xff]   ;;  %v1599_v24 = vld [vmem:[#allocation2 + $0x14] ss:$8 sps:$4 sm:$0xff]   ;;  %v1603_v26 = vld [vmem:[#allocation2 + $0x10] ss:$8 sps:$4 sm:$0xff]  }
  0x16   :  { %v1601_v25 = vld [vmem:[#allocation2 + $0x114] ss:$8 sps:$4 sm:$0xff]   ;;  %v1604_v27 = vld [vmem:[#allocation2 + $0x110] ss:$8 sps:$4 sm:$0xff]   ;;  %v1605_v28 = vld [vmem:[#allocation2 + $0x4] ss:$8 sps:$4 sm:$0xff]  }
  0x17   :  { %874 = vmatpush1.bf16.msra.mxu0 %v1579_v10  ;;  %v1607_v29 = vld [vmem:[#allocation2 + $0x104] ss:$8 sps:$4 sm:$0xff]   ;;  %v1609_v30 = vld [vmem:[#allocation2] ss:$8 sps:$4 sm:$0xff]   ;;  %v1611_v32 = vld [vmem:[#allocation2 + $0xf4] ss:$8 sps:$4 sm:$0xff]  }
  0x18   :  { %917 = vmatpush1.bf16.msra.mxu1 %v1580_v11  ;;  %875 = vmatprep.subr.bf16.mxu0 %v1581_v12  ;;  %v1610_v31 = vld [vmem:[#allocation2 + $0x100] ss:$8 sps:$4 sm:$0xff]   ;;  %v1613_v33 = vld [vmem:[#allocation2 + $0x1f4] ss:$8 sps:$4 sm:$0xff]   ;;  %v1615_v34 = vld [vmem:[#allocation2 + $0xf0] ss:$8 sps:$4 sm:$0xff]  }
  0x19   :  { %918 = vmatprep.subr.bf16.mxu1 %v1583_v13  ;;  %v1616_v35 = vld [vmem:[#allocation2 + $0x1f0] ss:$8 sps:$4 sm:$0xff]   ;;  %v1617_v36 = vld [vmem:[#allocation2 + $0xe4] ss:$8 sps:$4 sm:$0xff]   ;;  %v1621_v38 = vld [vmem:[#allocation2 + $0xe0] ss:$8 sps:$4 sm:$0xff]  }
  0x1a   :  { %v1619_v37 = vld [vmem:[#allocation2 + $0x1e4] ss:$8 sps:$4 sm:$0xff]   ;;  %v1622_v39 = vld [vmem:[#allocation2 + $0x1e0] ss:$8 sps:$4 sm:$0xff]   ;;  %v1623_v40 = vld [vmem:[#allocation2 + $0xd4] ss:$8 sps:$4 sm:$0xff]  }
  0x1b   :  { %876 = vmatpush1.bf16.msra.mxu0 %v1585_v14  ;;  %v1625_v41 = vld [vmem:[#allocation2 + $0x1d4] ss:$8 sps:$4 sm:$0xff]   ;;  %v1627_v42 = vld [vmem:[#allocation2 + $0xd0] ss:$8 sps:$4 sm:$0xff]   ;;  %v1629_v44 = vld [vmem:[#allocation2 + $0xc4] ss:$8 sps:$4 sm:$0xff]  }
  0x1c   :  { %919 = vmatpush1.bf16.msra.mxu1 %v1586_v15  ;;  %877 = vmatprep.subr.bf16.mxu0 %v1587_v16  ;;  %v1628_v43 = vld [vmem:[#allocation2 + $0x1d0] ss:$8 sps:$4 sm:$0xff]   ;;  %v1631_v45 = vld [vmem:[#allocation2 + $0x1c4] ss:$8 sps:$4 sm:$0xff]   ;;  %v1633_v46 = vld [vmem:[#allocation2 + $0xc0] ss:$8 sps:$4 sm:$0xff]  }
  0x1d   :  { %920 = vmatprep.subr.bf16.mxu1 %v1589_v17  ;;  %v1634_v47 = vld [vmem:[#allocation2 + $0x1c0] ss:$8 sps:$4 sm:$0xff]   ;;  %v1635_v52 = vld [vmem:[#allocation2 + $0xb4] ss:$8 sps:$4 sm:$0xff]   ;;  %v1639_v56 = vld [vmem:[#allocation2 + $0xb0] ss:$8 sps:$4 sm:$0xff]  }
  0x1e   :  { %v41_v48 = vld [vmem:[%s1985_s0] sm:$0xff]  ;;  %v42_v50 = vld [vmem:[%s1985_s0 + $0x8] sm:$0xff]  ;;  %v1637_v54 = vld [vmem:[#allocation2 + $0x1b4] ss:$8 sps:$4 sm:$0xff]   ;;  %vm1805_vm0 = vmmov 0  }
  0x1f   :  { %878 = vmatpush1.bf16.msra.mxu0 %v1591_v18  ;;  %v45_v49 = vld [vmem:[%s1985_s0 + $0x20] sm:$0xff]  ;;  %v46_v51 = vld [vmem:[%s1985_s0 + $0x28] sm:$0xff]  ;;  %v1640_v57 = vld [vmem:[#allocation2 + $0x1b0] ss:$8 sps:$4 sm:$0xff]  }
  0x20   :  { %921 = vmatpush1.bf16.msra.mxu1 %v1592_v19  ;;  %879 = vmatprep.subr.bf16.mxu0 %v1593_v20  ;;  %v1346_v53 = vcombine.high %v41_v48, %v45_v49  ;;  %v1348_v55 = vcombine.high %v42_v50, %v46_v51  ;;  %v1641_v58 = vld [vmem:[#allocation2 + $0xa4] ss:$8 sps:$4 sm:$0xff]   ;;  %v1645_v60 = vld [vmem:[#allocation2 + $0xa0] ss:$8 sps:$4 sm:$0xff]   ;;  %v1647_v62 = vld [vmem:[#allocation2 + $0x94] ss:$8 sps:$4 sm:$0xff]   ;;  %v1345_v8 = vcombine.low %v41_v48, %v45_v49 }
  0x21   :  { %922 = vmatprep.subr.bf16.mxu1 %v1595_v21  ;;  %v1643_v59 = vld [vmem:[#allocation2 + $0x1a4] ss:$8 sps:$4 sm:$0xff]   ;;  %v1646_v61 = vld [vmem:[#allocation2 + $0x1a0] ss:$8 sps:$4 sm:$0xff]   ;;  %v1649_v63 = vld [vmem:[#allocation2 + $0x194] ss:$8 sps:$4 sm:$0xff]   ;;  %v1347_v9 = vcombine.low %v42_v50, %v46_v51 }
  0x22   :  { %901 = vmatprep.mubr.bf16.mxu0 %v1346_v53  ;;  %944 = vmatprep.mubr.bf16.mxu1 %v1348_v55  ;;  %v1651_v0 = vld [vmem:[#allocation2 + $0x90] ss:$8 sps:$4 sm:$0xff]   ;;  %v1653_v2 = vld [vmem:[#allocation2 + $0x84] ss:$8 sps:$4 sm:$0xff]   ;;  %v1657_v4 = vld [vmem:[#allocation2 + $0x80] ss:$8 sps:$4 sm:$0xff]  }
  0x23   :  { %880 = vmatpush1.bf16.msra.mxu0 %v1597_v22  ;;  %v1652_v1 = vld [vmem:[#allocation2 + $0x190] ss:$8 sps:$4 sm:$0xff]   ;;  %v1655_v3 = vld [vmem:[#allocation2 + $0x184] ss:$8 sps:$4 sm:$0xff]   ;;  %v1658_v5 = vld [vmem:[#allocation2 + $0x180] ss:$8 sps:$4 sm:$0xff]  }
  0x24   :  { %923 = vmatpush1.bf16.msra.mxu1 %v1598_v23  ;;  %881 = vmatprep.subr.bf16.mxu0 %v1599_v24  ;;  %v1661_v6 = vld [vmem:[#allocation2 + $0x274] ss:$8 sps:$4 sm:$0xff]   ;;  %v1659_v10 = vld [vmem:[#allocation2 + $0x270] ss:$8 sps:$4 sm:$0xff]   ;;  %v1667_v12 = vld [vmem:[#allocation2 + $0x264] ss:$8 sps:$4 sm:$0xff]  }
  0x25   :  { %924 = vmatprep.subr.bf16.mxu1 %v1601_v25  ;;  %v1664_v7 = vld [vmem:[#allocation2 + $0x374] ss:$8 sps:$4 sm:$0xff]   ;;  %v1662_v11 = vld [vmem:[#allocation2 + $0x370] ss:$8 sps:$4 sm:$0xff]   ;;  %v1670_v13 = vld [vmem:[#allocation2 + $0x364] ss:$8 sps:$4 sm:$0xff]  }
  0x26   :  { %v1665_v14 = vld [vmem:[#allocation2 + $0x260] ss:$8 sps:$4 sm:$0xff]   ;;  %v1673_v16 = vld [vmem:[#allocation2 + $0x254] ss:$8 sps:$4 sm:$0xff]   ;;  %v1671_v18 = vld [vmem:[#allocation2 + $0x250] ss:$8 sps:$4 sm:$0xff]  }
  0x27   :  { %882 = vmatpush1.bf16.msra.mxu0 %v1603_v26  ;;  %v1668_v15 = vld [vmem:[#allocation2 + $0x360] ss:$8 sps:$4 sm:$0xff]   ;;  %v1676_v17 = vld [vmem:[#allocation2 + $0x354] ss:$8 sps:$4 sm:$0xff]   ;;  %v1674_v19 = vld [vmem:[#allocation2 + $0x350] ss:$8 sps:$4 sm:$0xff]  }
  0x28   :  { %925 = vmatpush1.bf16.msra.mxu1 %v1604_v27  ;;  %883 = vmatprep.subr.bf16.mxu0 %v1605_v28  ;;  %v1679_v20 = vld [vmem:[#allocation2 + $0x244] ss:$8 sps:$4 sm:$0xff]   ;;  %v1677_v22 = vld [vmem:[#allocation2 + $0x240] ss:$8 sps:$4 sm:$0xff]   ;;  %v1685_v24 = vld [vmem:[#allocation2 + $0x234] ss:$8 sps:$4 sm:$0xff]  }
  0x29   :  { %926 = vmatprep.subr.bf16.mxu1 %v1607_v29  ;;  %v1682_v21 = vld [vmem:[#allocation2 + $0x344] ss:$8 sps:$4 sm:$0xff]   ;;  %v1680_v23 = vld [vmem:[#allocation2 + $0x340] ss:$8 sps:$4 sm:$0xff]   ;;  %v1688_v25 = vld [vmem:[#allocation2 + $0x334] ss:$8 sps:$4 sm:$0xff]  }
  0x2a   :  { %v1683_v26 = vld [vmem:[#allocation2 + $0x230] ss:$8 sps:$4 sm:$0xff]   ;;  %v1691_v28 = vld [vmem:[#allocation2 + $0x224] ss:$8 sps:$4 sm:$0xff]   ;;  %v1716_v53 = vld [vmem:[#allocation2 + $0x3e0] ss:$8 sps:$4 sm:$0xff]  }
  0x2b   :  { %884 = vmatpush1.bf16.msra.mxu0 %v1609_v30  ;;  %v1686_v27 = vld [vmem:[#allocation2 + $0x330] ss:$8 sps:$4 sm:$0xff]   ;;  %v1694_v29 = vld [vmem:[#allocation2 + $0x324] ss:$8 sps:$4 sm:$0xff]   ;;  %v1689_v30 = vld [vmem:[#allocation2 + $0x220] ss:$8 sps:$4 sm:$0xff]  }
  0x2c   :  { %927 = vmatpush1.bf16.msra.mxu1 %v1610_v31  ;;  %885 = vmatprep.subr.bf16.mxu0 %v1611_v32  ;;  %v1692_v31 = vld [vmem:[#allocation2 + $0x320] ss:$8 sps:$4 sm:$0xff]   ;;  %v1697_v32 = vld [vmem:[#allocation2 + $0x214] ss:$8 sps:$4 sm:$0xff]   ;;  %v1707_v48 = vld [vmem:[#allocation2 + $0x2f0] ss:$8 sps:$4 sm:$0xff]  }
  0x2d   :  { %928 = vmatprep.subr.bf16.mxu1 %v1613_v33  ;;  %v1700_v33 = vld [vmem:[#allocation2 + $0x314] ss:$8 sps:$4 sm:$0xff]   ;;  %v1710_v49 = vld [vmem:[#allocation2 + $0x3f0] ss:$8 sps:$4 sm:$0xff]   ;;  %v1715_v50 = vld [vmem:[#allocation2 + $0x2e4] ss:$8 sps:$4 sm:$0xff]  }
  0x2e   :  { %v1718_v51 = vld [vmem:[#allocation2 + $0x3e4] ss:$8 sps:$4 sm:$0xff]   ;;  %v1724_v55 = vld [vmem:[#allocation2 + $0x3d4] ss:$8 sps:$4 sm:$0xff]  }
  0x2f   :  { %886 = vmatpush2.bf16.msra.mxu0 %v1615_v34  ;;  %v1695_v34 = vld [vmem:[#allocation2 + $0x210] ss:$8 sps:$4 sm:$0xff]  }
  0x30   :  { %929 = vmatpush2.bf16.msra.mxu1 %v1616_v35  ;;  %887 = vmatprep.subr.bf16.mxu0 %v1617_v36  ;;  %v1698_v35 = vld [vmem:[#allocation2 + $0x310] ss:$8 sps:$4 sm:$0xff]  }
  0x31   :  { %930 = vmatprep.subr.bf16.mxu1 %v1619_v37  ;;  %v1864_v36 = vld [vmem:[%s1985_s0 + $0x10] sm:$0xff]  ;;  %v1703_v37 = vld [vmem:[#allocation2 + $0x204] ss:$8 sps:$4 sm:$0xff]  }
  0x33   :  { %888 = vmatpush2.bf16.msra.mxu0 %v1621_v38  ;;  %v1869_v38 = vld [vmem:[%s1985_s0 + $0x30] sm:$0xff] }
  0x34   :  { %931 = vmatpush2.bf16.msra.mxu1 %v1622_v39  ;;  %889 = vmatprep.subr.bf16.mxu0 %v1623_v40  ;;  %v1874_v39 = vld [vmem:[%s1985_s0 + $0x18] sm:$0xff] }
  0x35   :  { %932 = vmatprep.subr.bf16.mxu1 %v1625_v41  ;;  %v1879_v40 = vld [vmem:[%s1985_s0 + $0x38] sm:$0xff]  ;;  %v1706_v41 = vld [vmem:[#allocation2 + $0x304] ss:$8 sps:$4 sm:$0xff]  }
  0x37   :  { %890 = vmatpush2.bf16.msra.mxu0 %v1627_v42  ;;  %v1350_v42 = vcombine.high %v1864_v36, %v1869_v38 }
  0x38   :  { %933 = vmatpush2.bf16.msra.mxu1 %v1628_v43  ;;  %891 = vmatprep.subr.bf16.mxu0 %v1629_v44  ;;  %v1352_v43 = vcombine.high %v1874_v39, %v1879_v40  ;;  %v1701_v44 = vld [vmem:[#allocation2 + $0x200] ss:$8 sps:$4 sm:$0xff]  }
  0x39   :  { %934 = vmatprep.subr.bf16.mxu1 %v1631_v45  ;;  %v1704_v45 = vld [vmem:[#allocation2 + $0x300] ss:$8 sps:$4 sm:$0xff]  }
  0x3b   :  { %892 = vmatpush2.bf16.msra.mxu0 %v1633_v46  ;;  %v1709_v46 = vld [vmem:[#allocation2 + $0x2f4] ss:$8 sps:$4 sm:$0xff]  }
  0x3c   :  { %935 = vmatpush2.bf16.msra.mxu1 %v1634_v47  ;;  %893 = vmatprep.subr.bf16.mxu0 %v1635_v52  ;;  %v1712_v47 = vld [vmem:[#allocation2 + $0x3f4] ss:$8 sps:$4 sm:$0xff]   ;;  %v1713_v52 = vld [vmem:[#allocation2 + $0x2e0] ss:$8 sps:$4 sm:$0xff]  }
  0x3d   :  { %936 = vmatprep.subr.bf16.mxu1 %v1637_v54  ;;  %v1721_v54 = vld [vmem:[#allocation2 + $0x2d4] ss:$8 sps:$4 sm:$0xff]  }
  0x3f   :  { %894 = vmatpush2.bf16.msra.mxu0 %v1639_v56  ;;  %v1719_v56 = vld [vmem:[#allocation2 + $0x2d0] ss:$8 sps:$4 sm:$0xff]  }
  0x40   :  { %937 = vmatpush2.bf16.msra.mxu1 %v1640_v57  ;;  %895 = vmatprep.subr.bf16.mxu0 %v1641_v58  ;;  %v1722_v57 = vld [vmem:[#allocation2 + $0x3d0] ss:$8 sps:$4 sm:$0xff]   ;;  %v1727_v58 = vld [vmem:[#allocation2 + $0x2c4] ss:$8 sps:$4 sm:$0xff]  }
  0x41   :  { %938 = vmatprep.subr.bf16.mxu1 %v1643_v59  ;;  %v1730_v59 = vld [vmem:[#allocation2 + $0x3c4] ss:$8 sps:$4 sm:$0xff]  }
  0x43   :  { %896 = vmatpush2.bf16.msra.mxu0 %v1645_v60  ;;  %v1725_v60 = vld [vmem:[#allocation2 + $0x2c0] ss:$8 sps:$4 sm:$0xff]  }
  0x44   :  { %939 = vmatpush2.bf16.msra.mxu1 %v1646_v61  ;;  %897 = vmatprep.subr.bf16.mxu0 %v1647_v62  ;;  %v1728_v61 = vld [vmem:[#allocation2 + $0x3c0] ss:$8 sps:$4 sm:$0xff]   ;;  %v1733_v62 = vld [vmem:[#allocation2 + $0x2b4] ss:$8 sps:$4 sm:$0xff]  }
  0x45   :  { %940 = vmatprep.subr.bf16.mxu1 %v1649_v63  ;;  %v1736_v63 = vld [vmem:[#allocation2 + $0x3b4] ss:$8 sps:$4 sm:$0xff]  }
  0x47   :  { %898 = vmatpush2.bf16.msra.mxu0 %v1651_v0  ;;  %v1731_v0 = vld [vmem:[#allocation2 + $0x2b0] ss:$8 sps:$4 sm:$0xff]  }
  0x48   :  { %941 = vmatpush2.bf16.msra.mxu1 %v1652_v1  ;;  %899 = vmatprep.subr.bf16.mxu0 %v1653_v2  ;;  %v1734_v1 = vld [vmem:[#allocation2 + $0x3b0] ss:$8 sps:$4 sm:$0xff]   ;;  %v1739_v2 = vld [vmem:[#allocation2 + $0x2a4] ss:$8 sps:$4 sm:$0xff]  }
  0x49   :  { %942 = vmatprep.subr.bf16.mxu1 %v1655_v3  ;;  %v1742_v3 = vld [vmem:[#allocation2 + $0x3a4] ss:$8 sps:$4 sm:$0xff]  }
  0x4b   :  { %900 = vmatpush2.bf16.msra.mxu0 %v1657_v4  ;;  %v1737_v4 = vld [vmem:[#allocation2 + $0x2a0] ss:$8 sps:$4 sm:$0xff]  }
  0x4c   :  { %943 = vmatpush2.bf16.msra.mxu1 %v1658_v5  ;;  %955 = vmatprep.subr.bf16.mxu0 %v1661_v6  ;;  %v1740_v5 = vld [vmem:[#allocation2 + $0x3a0] ss:$8 sps:$4 sm:$0xff]   ;;  %v1745_v6 = vld [vmem:[#allocation2 + $0x294] ss:$8 sps:$4 sm:$0xff]  }
  0x4d   :  { %998 = vmatprep.subr.bf16.mxu1 %v1664_v7  ;;  %v1748_v7 = vld [vmem:[#allocation2 + $0x394] ss:$8 sps:$4 sm:$0xff]  }
  0x4e   :  { %902 = vmatmul.mubr.bf16.vlgmr.msra.gmra.mxu0 %v1345_v8  ;;  %v1743_v8 = vld [vmem:[#allocation2 + $0x290] ss:$8 sps:$4 sm:$0xff]  }
  0x4f   :  { %945 = vmatmul.mubr.bf16.vlgmr.msra.gmra.mxu1 %v1347_v9  ;;  %956 = vmatpush1.bf16.msra.mxu0 %v1659_v10  ;;  %v1746_v9 = vld [vmem:[#allocation2 + $0x390] ss:$8 sps:$4 sm:$0xff]   ;;  %v1751_v10 = vld [vmem:[#allocation2 + $0x284] ss:$8 sps:$4 sm:$0xff]  }
  0x50   :  { %999 = vmatpush1.bf16.msra.mxu1 %v1662_v11  ;;  %957 = vmatprep.subr.bf16.mxu0 %v1667_v12  ;;  %v1754_v11 = vld [vmem:[#allocation2 + $0x384] ss:$8 sps:$4 sm:$0xff]   ;;  %v1749_v12 = vld [vmem:[#allocation2 + $0x280] ss:$8 sps:$4 sm:$0xff]  }
  0x51   :  { %1000 = vmatprep.subr.bf16.mxu1 %v1670_v13  ;;  %987 = vmatprep.mubr.bf16.mxu0 %v1350_v42  ;;  %v1752_v13 = vld [vmem:[#allocation2 + $0x380] ss:$8 sps:$4 sm:$0xff]  }
  0x52   :  { %1030 = vmatprep.mubr.bf16.mxu1 %v1352_v43  ;;  %v177_v42 = vld [vmem:[%s1987_s2] sm:$0x3] }
  0x53   :  { %958 = vmatpush1.bf16.msra.mxu0 %v1665_v14  ;;  %v1349_v14 = vcombine.low %v1864_v36, %v1869_v38  ;;  %v1774_v36 = vld [vmem:[%s1990_s5 + $0x20] sm:$0xff]  }
  0x54   :  { %1001 = vmatpush1.bf16.msra.mxu1 %v1668_v15  ;;  %959 = vmatprep.subr.bf16.mxu0 %v1673_v16  ;;  %v1351_v15 = vcombine.low %v1874_v39, %v1879_v40  ;;  %v1755_v16 = vld [vmem:[%s1988_s3 + $0x78] sm:$0xff]  }
  0x55   :  { %1002 = vmatprep.subr.bf16.mxu1 %v1676_v17  ;;  %v1756_v17 = vld [vmem:[%s1988_s3 + $0x38] sm:$0xff]  }
  0x57   :  { %960 = vmatpush1.bf16.msra.mxu0 %v1671_v18  ;;  %v1757_v18 = vld [vmem:[%s1988_s3 + $0x70] sm:$0xff]  }
  0x58   :  { %1003 = vmatpush1.bf16.msra.mxu1 %v1674_v19  ;;  %961 = vmatprep.subr.bf16.mxu0 %v1679_v20  ;;  %v1758_v19 = vld [vmem:[%s1988_s3 + $0x30] sm:$0xff]   ;;  %v1759_v20 = vld [vmem:[%s1988_s3 + $0x68] sm:$0xff]  }
  0x59   :  { %1004 = vmatprep.subr.bf16.mxu1 %v1682_v21  ;;  %v1760_v21 = vld [vmem:[%s1988_s3 + $0x28] sm:$0xff]  }
  0x5b   :  { %962 = vmatpush1.bf16.msra.mxu0 %v1677_v22  ;;  %v1761_v22 = vld [vmem:[%s1988_s3 + $0x60] sm:$0xff]  }
  0x5c   :  { %1005 = vmatpush1.bf16.msra.mxu1 %v1680_v23  ;;  %963 = vmatprep.subr.bf16.mxu0 %v1685_v24  ;;  %v1762_v23 = vld [vmem:[%s1988_s3 + $0x20] sm:$0xff]   ;;  %v1763_v24 = vld [vmem:[%s1988_s3 + $0x58] sm:$0xff]  }
  0x5d   :  { %1006 = vmatprep.subr.bf16.mxu1 %v1688_v25  ;;  %v1764_v25 = vld [vmem:[%s1988_s3 + $0x18] sm:$0xff]  }
  0x5f   :  { %964 = vmatpush1.bf16.msra.mxu0 %v1683_v26  ;;  %v1765_v26 = vld [vmem:[%s1988_s3 + $0x50] sm:$0xff]  }
  0x60   :  { %1007 = vmatpush1.bf16.msra.mxu1 %v1686_v27  ;;  %965 = vmatprep.subr.bf16.mxu0 %v1691_v28  ;;  %v1766_v27 = vld [vmem:[%s1988_s3 + $0x10] sm:$0xff]   ;;  %v1767_v28 = vld [vmem:[%s1988_s3 + $0x48] sm:$0xff]  }
  0x61   :  { %1008 = vmatprep.subr.bf16.mxu1 %v1694_v29  ;;  %v1768_v29 = vld [vmem:[%s1988_s3 + $0x8] sm:$0xff]  }
  0x63   :  { %966 = vmatpush1.bf16.msra.mxu0 %v1689_v30  ;;  %v1769_v30 = vld [vmem:[%s1988_s3 + $0x40] sm:$0xff]  }
  0x64   :  { %1009 = vmatpush1.bf16.msra.mxu1 %v1692_v31  ;;  %967 = vmatprep.subr.bf16.mxu0 %v1697_v32  ;;  %v1770_v31 = vld [vmem:[%s1988_s3] sm:$0xff]   ;;  %v1771_v32 = vld [vmem:[%s1990_s5 + $0x38] sm:$0xff]  }
  0x65   :  { %1010 = vmatprep.subr.bf16.mxu1 %v1700_v33  ;;  %v1804_v33 = vmov 0.0  }
  0x67   :  { %968 = vmatpush1.bf16.msra.mxu0 %v1695_v34  ;;  %v1772_v34 = vld [vmem:[%s1990_s5 + $0x30] sm:$0xff]  }
  0x68   :  { %1011 = vmatpush1.bf16.msra.mxu1 %v1698_v35  ;;  %969 = vmatprep.subr.bf16.mxu0 %v1703_v37  ;;  %v1773_v35 = vld [vmem:[%s1990_s5 + $0x28] sm:$0xff]   ;;  %v179_v37 = vlaneseq }
  0x69   :  { %1012 = vmatprep.subr.bf16.mxu1 %v1706_v41 }
  0x6a   :  { %v180_v38 = vshrl.u32 %v179_v37, 7 }
  0x6b   :  { %970 = vmatpush1.bf16.msra.mxu0 %v1701_v44 }
  0x6c   :  { %1013 = vmatpush1.bf16.msra.mxu1 %v1704_v45  ;;  %971 = vmatprep.subr.bf16.mxu0 %v1709_v46  ;;  %v185_v41 = vsub.s32 1, %v180_v38  ;;  %v181_v43 = vsub.s32 0, %v180_v38 }
  0x6d   :  { %1014 = vmatprep.subr.bf16.mxu1 %v1712_v47 }
  0x6e   :  { %v186_v46 = vrot.slane %v177_v42, %v185_v41  ;;  %v182_v47 = vrot.slane %v177_v42, %v181_v43 }
  0x6f   :  { %972 = vmatpush2.bf16.msra.mxu0 %v1707_v48 }
  0x70   :  { %1015 = vmatpush2.bf16.msra.mxu1 %v1710_v49  ;;  %973 = vmatprep.subr.bf16.mxu0 %v1715_v50 }
  0x71   :  { %1016 = vmatprep.subr.bf16.mxu1 %v1718_v51 }
  0x73   :  { %974 = vmatpush2.bf16.msra.mxu0 %v1713_v52 }
  0x74   :  { %1017 = vmatpush2.bf16.msra.mxu1 %v1716_v53  ;;  %975 = vmatprep.subr.bf16.mxu0 %v1721_v54 }
  0x75   :  { %1018 = vmatprep.subr.bf16.mxu1 %v1724_v55 }
  0x77   :  { %976 = vmatpush2.bf16.msra.mxu0 %v1719_v56 }
  0x78   :  { %1019 = vmatpush2.bf16.msra.mxu1 %v1722_v57  ;;  %977 = vmatprep.subr.bf16.mxu0 %v1727_v58 }
  0x79   :  { %1020 = vmatprep.subr.bf16.mxu1 %v1730_v59 }
  0x7b   :  { %978 = vmatpush2.bf16.msra.mxu0 %v1725_v60 }
  0x7c   :  { %1021 = vmatpush2.bf16.msra.mxu1 %v1728_v61  ;;  %979 = vmatprep.subr.bf16.mxu0 %v1733_v62 }
  0x7d   :  { %1022 = vmatprep.subr.bf16.mxu1 %v1736_v63 }
  0x7f   :  { %980 = vmatpush2.bf16.msra.mxu0 %v1731_v0 }
  0x80   :  { %1023 = vmatpush2.bf16.msra.mxu1 %v1734_v1  ;;  %981 = vmatprep.subr.bf16.mxu0 %v1739_v2 }
  0x81   :  { %1024 = vmatprep.subr.bf16.mxu1 %v1742_v3 }
  0x83   :  { %982 = vmatpush2.bf16.msra.mxu0 %v1737_v4 }
  0x84   :  { %1025 = vmatpush2.bf16.msra.mxu1 %v1740_v5  ;;  %983 = vmatprep.subr.bf16.mxu0 %v1745_v6 }
  0x85   :  { %1026 = vmatprep.subr.bf16.mxu1 %v1748_v7 }
  0x87   :  { %984 = vmatpush2.bf16.msra.mxu0 %v1743_v8 }
  0x88   :  { %1027 = vmatpush2.bf16.msra.mxu1 %v1746_v9  ;;  %985 = vmatprep.subr.bf16.mxu0 %v1751_v10 }
  0x89   :  { %1028 = vmatprep.subr.bf16.mxu1 %v1754_v11 }
  0x8b   :  { %986 = vmatpush2.bf16.msra.mxu0 %v1749_v12 }
  0x8c   :  { %1029 = vmatpush2.bf16.msra.mxu1 %v1752_v13  ;;  %1507 = vmatprep.subr.bf16.mxu0 %v1755_v16 }
  0x8d   :  { %1538 = vmatprep.subr.bf16.mxu1 %v1804_v33 }
  0x8e   :  { %988 = vmatmul.mubr.bf16.vlgmr.msra.gmra.mxu0 %v1349_v14 }
  0x8f   :  { %1031 = vmatmul.mubr.bf16.vlgmr.msra.gmra.mxu1 %v1351_v15  ;;  %1508 = vmatpush3.bf16.msra.mxu0 %v1756_v17 }
  0x90   :  { %1509 = vmatprep.subr.bf16.mxu0 %v1757_v18  ;;  %1539 = vmatpush3.bf16.msra.mxu1 %v1771_v32  ;;  %v1775_v18 = vld [vmem:[%s1990_s5 + $0x18] sm:$0xff]  }
  0x91   :  { %1540 = vmatprep.subr.bf16.mxu1 %v1804_v33  ;;  %1554 = vmatprep.mubr.msk.bf16.mxu1 %vm1805_vm0, %v1804_v33 }
  0x93   :  { %1510 = vmatpush3.bf16.msra.mxu0 %v1758_v19  ;;  %v1776_v19 = vld [vmem:[%s1990_s5 + $0x10] sm:$0xff]  }
  0x94   :  { %1511 = vmatprep.subr.bf16.mxu0 %v1759_v20  ;;  %1541 = vmatpush3.bf16.msra.mxu1 %v1772_v34  ;;  %v1777_v20 = vld [vmem:[%s1990_s5 + $0x8] sm:$0xff]  }
  0x95   :  { %1542 = vmatprep.subr.bf16.mxu1 %v1804_v33 }
  0x97   :  { %1512 = vmatpush3.bf16.msra.mxu0 %v1760_v21  ;;  %v1778_v21 = vld [vmem:[%s1990_s5] sm:$0xff]  }
  0x98   :  { %1513 = vmatprep.subr.bf16.mxu0 %v1761_v22  ;;  %1543 = vmatpush3.bf16.msra.mxu1 %v1773_v35 }
  0x99   :  { %1544 = vmatprep.subr.bf16.mxu1 %v1804_v33 }
  0x9b   :  { %1514 = vmatpush3.bf16.msra.mxu0 %v1762_v23 }
  0x9c   :  { %1515 = vmatprep.subr.bf16.mxu0 %v1763_v24  ;;  %1545 = vmatpush3.bf16.msra.mxu1 %v1774_v36 }
  0x9d   :  { %1546 = vmatprep.subr.bf16.mxu1 %v1804_v33 }
  0x9f   :  { %1516 = vmatpush3.bf16.msra.mxu0 %v1764_v25  ;;  %v1481_v25 = vld [vmem:[%s1989_s4] ss:$0 sm:$0xff] }
  0xa0   :  { %1517 = vmatprep.subr.bf16.mxu0 %v1765_v26  ;;  %1547 = vmatpush3.bf16.msra.mxu1 %v1775_v18 }
  0xa1   :  { %1548 = vmatprep.subr.bf16.mxu1 %v1804_v33 }
  0xa3   :  { %1518 = vmatpush3.bf16.msra.mxu0 %v1766_v27 }
  0xa4   :  { %1519 = vmatprep.subr.bf16.mxu0 %v1767_v28  ;;  %1549 = vmatpush3.bf16.msra.mxu1 %v1776_v19 }
  0xa5   :  { %1550 = vmatprep.subr.bf16.mxu1 %v1804_v33 }
  0xa7   :  { %1520 = vmatpush3.bf16.msra.mxu0 %v1768_v29 }
  0xa8   :  { %1521 = vmatprep.subr.bf16.mxu0 %v1769_v30  ;;  %1551 = vmatpush3.bf16.msra.mxu1 %v1777_v20 }
  0xa9   :  { %1552 = vmatprep.subr.bf16.mxu1 %v1804_v33  ;;  %v1498_v33 = vld [vmem:[%s1991_s6] ss:$0 sm:$0xff] }
  0xab   :  { %1522 = vmatpush3.bf16.msra.mxu0 %v1770_v31 }
  0xac   :  { %1553 = vmatpush3.bf16.msra.mxu1 %v1778_v21 }
 0x10e   :  { %v903_v39 = vpop.f32.mrf.mxu0 }
 0x10f   :  { %v946_v40 = vpop.f32.mrf.mxu1  ;;  %v904_v51 = vadd.f32 %v903_v39, %v182_v47 }
 0x110   :  { %v905_v44 = vpop.f32.mrf.mxu0 }
 0x111   :  { %v948_v45 = vpop.f32.mrf.mxu1  ;;  %v906_v50 = vadd.f32 %v905_v44, %v186_v46  ;;  %v947_v59 = vadd.f32 %v946_v40, %v904_v51 }
 0x112   :  { %v907_v48 = vpop.f32.mrf.mxu0 }
 0x113   :  { %v950_v49 = vpop.f32.mrf.mxu1  ;;  %v908_v54 = vadd.f32 %v907_v48, %v182_v47  ;;  %v949_v57 = vadd.f32 %v948_v45, %v906_v50 }
 0x114   :  { %v909_v52 = vpop.f32.mrf.mxu0 }
 0x115   :  { %v952_v53 = vpop.f32.mrf.mxu1  ;;  %v910_v58 = vadd.f32 %v909_v52, %v186_v46  ;;  %v951_v62 = vadd.f32 %v950_v49, %v908_v54 }
 0x117   :  { %v953_v3 = vadd.f32 %v952_v53, %v910_v58 }
 0x14e   :  { %v989_v55 = vpop.f32.mrf.mxu0 }
 0x14f   :  { %v1032_v56 = vpop.f32.mrf.mxu1  ;;  %v990_v0 = vadd.f32 %v989_v55, %v947_v59 }
 0x150   :  { %v991_v60 = vpop.f32.mrf.mxu0 }
 0x151   :  { %v1034_v61 = vpop.f32.mrf.mxu1  ;;  %v992_v63 = vadd.f32 %v991_v60, %v949_v57  ;;  %v1033_v9 = vadd.f32 %v1032_v56, %v990_v0 }
 0x152   :  { %v993_v1 = vpop.f32.mrf.mxu0 }
 0x153   :  { %v1036_v2 = vpop.f32.mrf.mxu1  ;;  %v994_v4 = vadd.f32 %v993_v1, %v951_v62  ;;  %v1035_v6 = vadd.f32 %v1034_v61, %v992_v63  ;;  %v1041_v15 = vmax.f32 %v1033_v9, 0.0 }
 0x154   :  { %v995_v5 = vpop.f32.mrf.mxu0 }
 0x155   :  { %v1037_v7 = vadd.f32 %v1036_v2, %v994_v4  ;;  %v996_v8 = vadd.f32 %v995_v5, %v953_v3  ;;  %v1038_v10 = vpop.f32.mrf.mxu1  ;;  %v1042_v13 = vmax.f32 %v1035_v6, 0.0 }
 0x157   :  { %v1039_v11 = vadd.f32 %v1038_v10, %v996_v8  ;;  %v1043_v12 = vmax.f32 %v1037_v7, 0.0 }
 0x159   :  { %v1044_v14 = vmax.f32 %v1039_v11, 0.0  ;;  %v1045_v17 = vpack.c.bf16 %v1043_v12, %v1041_v15 }
 0x15b   :  { %v1046_v16 = vpack.c.bf16 %v1044_v14, %v1042_v13 }
 0x15d   :  { %1214 = vmatprep.mubr.bf16.mxu0 %v1046_v16 }
 0x15e   :  { %1215 = vmatmul.mubr.bf16.vlgmr.msra.gmra.mxu0 %v1045_v17 }
 0x21e   :  { %v1523_v22 = vpop.f32.mrf.mxu0 }
 0x220   :  { %v1524_v23 = vpop.f32.mrf.mxu0 }
 0x221   :  { %v1525_v24 = vadd.f32 %v1524_v23, %v1523_v22 }
 0x222   :  { %v1526_v26 = vpop.f32.mrf.mxu0 }
 0x223   :  { %v1217_v28 = vadd.f32 %v1525_v24, %v1481_v25 }
 0x224   :  { %v1527_v27 = vpop.f32.mrf.mxu0 }
 0x225   :  { %v1528_v29 = vadd.f32 %v1527_v27, %v1526_v26  ;;  %v1223_v31 = vmax.f32 %v1217_v28, 0.0 }
 0x227   :  { %v1220_v30 = vadd.f32 %v1528_v29, %v1481_v25 }
 0x229   :  { %v1224_v32 = vmax.f32 %v1220_v30, 0.0 }
 0x22b   :  { %v1225_v34 = vpack.c.bf16 %v1224_v32, %v1223_v31 }
 0x22d   :  { %1555 = vmatmul.mubr.bf16.vlgmr.msra.gmra.mxu1 %v1225_v34 }
 0x2ed   :  { %v1331_v35 = vpop.f32.mrf.mxu1 }
 0x2ee   :  { %v1332_v36 = vadd.f32 %v1498_v33, %v1331_v35 }
 0x2ef   :  { %v1556_v37 = vpop.f32.mrf.mxu1 }
 0x2f0   :  { %1338 = vst [vmem:[%s1992_s7] sm:$0xff] %v1332_v36 }
 0x2f1   :  { %v1334_v38 = vpop.f32.mrf.mxu1 }
 0x2f2   :  { %v1335_v39 = vadd.f32 %v1498_v33, %v1334_v38 }
 0x2f3   :  { %v1557_v40 = vpop.f32.mrf.mxu1 }
 0x2f4   :  { %1339 = vst [vmem:[%s1992_s7 + $0x8] sm:$0xff] %v1335_v39 }
 0x2f5   :  { %1344 = vsyncpa [#allocation3], 1 }

</bundles_post_ra>
